<compile_context>
chip_gen: v7x
topology: tpu7x:2x2x1
jax: 0.10.0
libtpu: 0.0.40
codegen_flags: <defaults>
</compile_context>

<pallas_src>
import functools

import jax
import jax.numpy as jnp
from jax.experimental import pallas as pl
from jax.experimental.pallas import tpu as pltpu


def _round_up(x, m):
    return ((x + m - 1) // m) * m


def _permute_gate_cols(w):
    """Reorder the trailing 4H gate columns from PyTorch [i,f,g,o] to [i,f,o,g]
    so the kernel applies sigmoid to one contiguous 3H slice and tanh to one H slice."""
    i, f, g, o = jnp.split(w, 4, axis=-1)
    return jnp.concatenate([i, f, o, g], axis=-1)


# ----------------------------- fused Pallas kernel ---------------------------
def fused_lstm_encoder_kernel(ids_ref, emb_hbm_ref, wih_ref, whh_ref, bias_ref,
                              h0_ref, c0_ref, hc_out_ref, x_buf, dma_sems, *,
                              num_layers, hidden_dims, compute_dtype):
    """DMA embedding gather + num_layers single-step LSTM cells in one launch.

    Gate columns are pre-permuted to [i, f, o, g].
      layer 0   : gates = x0 @ W_ih^T + h @ W_hh^T + b
      layer >=1 : gates = h @ (W_ih^T + W_hh^T) + b          (x == h re-fed)
      c' = sigmoid(f)*c + sigmoid(i)*tanh(g);  h' = sigmoid(o)*tanh(c')
    """
    H = hidden_dims
    TB = h0_ref.shape[0]                      # batch tile (static)
    base = pl.program_id(0) * TB              # first row of this batch tile

    # --- Embedding row gather: DMA exactly TB rows from the HBM table into VMEM.
    # TODO(synk): for large TB use pl.loop instead of a static Python unroll.
    for b in range(TB):
        idx = ids_ref[base + b]                                      # SMEM scalar
        pltpu.make_async_copy(emb_hbm_ref.at[pl.ds(idx, 1), :],
                              x_buf.at[pl.ds(b, 1), :],
                              dma_sems.at[b]).start()
    for b in range(TB):
        idx = ids_ref[base + b]
        pltpu.make_async_copy(emb_hbm_ref.at[pl.ds(idx, 1), :],
                              x_buf.at[pl.ds(b, 1), :],
                              dma_sems.at[b]).wait()

    # --- Weights / bias, hoisted out of the layer loop.
    wih = wih_ref[...].astype(compute_dtype)                         # (E, 4H)
    whh = whh_ref[...].astype(compute_dtype)                         # (H, 4H)
    # W_sum for layers >= 1 (x == h): one f32 add, once per kernel, then cast.
    wsum = (wih_ref[...].astype(jnp.float32)
            + whh_ref[...].astype(jnp.float32)).astype(compute_dtype)  # (H, 4H)
    bias = jnp.broadcast_to(bias_ref[...], (TB, 4 * H))               # (TB, 4H) f32

    def gate_step(gates, c):
        # Permuted gate order [i, f, o, g]: one EUP sigmoid over 3H lanes, one tanh.
        sig = jax.nn.sigmoid(gates[:, :3 * H])
        i_g = sig[:, 0 * H:1 * H]
        f_g = sig[:, 1 * H:2 * H]
        o_g = sig[:, 2 * H:3 * H]
        g_g = jnp.tanh(gates[:, 3 * H:4 * H])
        c_new = f_g * c + i_g * g_g
        h_new = o_g * jnp.tanh(c_new)
        return h_new, c_new

    # --- Layer 0: x = embedding row, h = initial hidden (two K=H dots, no concat).
    x0 = x_buf[...].astype(compute_dtype)                             # (TB, E)
    h = h0_ref[...]
    c = c0_ref[...]
    gates0 = (jnp.dot(x0, wih, preferred_element_type=jnp.float32)
              + jnp.dot(h.astype(compute_dtype), whh,
                        preferred_element_type=jnp.float32)
              + bias)
    h, c = gate_step(gates0, c)

    # --- Layers 1..L-1: x == h  ->  single K=H matmul against W_sum.
    def layer_step(_, carry):
        h, c = carry
        gates = jnp.dot(h.astype(compute_dtype), wsum,
                        preferred_element_type=jnp.float32) + bias
        return gate_step(gates, c)

    h, c = jax.lax.fori_loop(0, num_layers - 1, layer_step, (h, c), unroll=True)

    # --- Two direct stores into one lane-dense (TB, 2H) slab (wrapper splits it).
    hc_out_ref[:, :H] = h.astype(hc_out_ref.dtype)
    hc_out_ref[:, H:] = c.astype(hc_out_ref.dtype)


# ------------------------------ Encoder wrapper -------------------------------
class LSTMEncoderPallas:
    def __init__(self, vocab_size, embedding_dims, hidden_dims, num_layers, key,
                 param_dtype=jnp.float32):
        assert embedding_dims == hidden_dims, (
            "the PyTorch forward loop re-feeds LSTM output as input; "
            "it only works when embedding_dims == hidden_dims")
        self.vocab_size = vocab_size
        self.embedding_dims = embedding_dims
        self.hidden_dims = hidden_dims
        self.num_layers = num_layers
        self.param_dtype = param_dtype

        k_emb, k_wih, k_whh, k_bih, k_bhh = jax.random.split(key, 5)
        bound = 1.0 / (hidden_dims ** 0.5)

        # Embedding table with padding_idx=0 -> row 0 is zeros (PyTorch behavior).
        emb = jax.random.normal(k_emb, (vocab_size, embedding_dims), jnp.float32)
        emb = emb.at[0].set(0.0)

        # nn.LSTM parameters: W_ih (4H, E), W_hh (4H, H), b_ih (4H,), b_hh (4H,)
        w_ih = jax.random.uniform(k_wih, (4 * hidden_dims, embedding_dims),
                                  jnp.float32, -bound, bound)
        w_hh = jax.random.uniform(k_whh, (4 * hidden_dims, hidden_dims),
                                  jnp.float32, -bound, bound)
        b_ih = jax.random.uniform(k_bih, (4 * hidden_dims,), jnp.float32, -bound, bound)
        b_hh = jax.random.uniform(k_bhh, (4 * hidden_dims,), jnp.float32, -bound, bound)

        # f32 master copies (used by the pure-JAX reference, PyTorch gate order).
        self.embedding_table_f32 = emb
        self.w_ih = w_ih
        self.w_hh = w_hh
        self.bias_master = (b_ih + b_hh)[None, :]                    # (1, 4H) f32

        # Kernel layout: transposed weights with gate columns permuted to [i,f,o,g].
        # Embedding table stays f32: only B rows are DMA'd per call (gather), so its
        # dtype is irrelevant for bandwidth and f32 keeps the padding row exact.
        self.wih_t = _permute_gate_cols(w_ih.T).astype(param_dtype)   # (E, 4H)
        self.whh_t = _permute_gate_cols(w_hh.T).astype(param_dtype)   # (H, 4H)
        self.bias_kernel = _permute_gate_cols(self.bias_master)       # (1, 4H) f32

    def initialize_hidden_plus_cell(self, batch_size, key):
        kh, kc = jax.random.split(key)
        zero_hidden = jax.random.normal(kh, (1, batch_size, self.hidden_dims), jnp.float32)
        zero_cell = jax.random.normal(kc, (1, batch_size, self.hidden_dims), jnp.float32)
        return zero_hidden, zero_cell

    def _fused_call(self, ids_pad, h_pad, c_pad, tile_batch):
        B_pad, H = h_pad.shape
        E = self.embedding_dims
        TB = tile_batch
        n_tiles = B_pad // TB

        kernel = functools.partial(
            fused_lstm_encoder_kernel,
            num_layers=self.num_layers,
            hidden_dims=H,
            compute_dtype=self.param_dtype,
        )

        grid_spec = pltpu.PrefetchScalarGridSpec(
            num_scalar_prefetch=1,                                  # ids -> SMEM
            grid=(n_tiles,),
            in_specs=[
                pl.BlockSpec(memory_space=pl.ANY),                  # emb table (HBM)
                pl.BlockSpec((E, 4 * H), lambda i, ids: (0, 0)),    # W_ih^T (resident)
                pl.BlockSpec((H, 4 * H), lambda i, ids: (0, 0)),    # W_hh^T (resident)
                pl.BlockSpec((1, 4 * H), lambda i, ids: (0, 0)),    # fused bias
                pl.BlockSpec((TB, H), lambda i, ids: (i, 0)),       # h0 tile
                pl.BlockSpec((TB, H), lambda i, ids: (i, 0)),       # c0 tile
            ],
            out_specs=pl.BlockSpec((TB, 2 * H), lambda i, ids: (i, 0)),
            scratch_shapes=[
                pltpu.VMEM((TB, E), jnp.float32),                   # gathered x0
                pltpu.SemaphoreType.DMA((TB,)),                     # per-row DMA sems
            ],
        )

        # Explicit VMEM budget (v7x has only 64 MiB physical / 32 MiB scoped default).
        itemsize = jnp.dtype(self.param_dtype).itemsize
        weight_bytes = 2 * (E + H) * 4 * H * itemsize               # wih+whh, dbl-buffered
        work_bytes = (TB * E                                        # x0 scratch
                      + 4 * TB * H                                  # h/c blocks (dbl-buf)
                      + 4 * TB * H                                  # hc output (dbl-buf)
                      + (E + H) * 4 * H                             # in-kernel wsum/casts
                      + 6 * TB * 4 * H                              # gates + temporaries
                      + 2 * 4 * H) * 4
        vmem_limit = int(min(120 << 20, max(4 << 20, 2 * (weight_bytes + work_bytes))))

        return pl.pallas_call(
            kernel,
            out_shape=jax.ShapeDtypeStruct((B_pad, 2 * H), jnp.float32),
            grid_spec=grid_spec,
            compiler_params=pltpu.CompilerParams(
                dimension_semantics=("parallel",),
                vmem_limit_bytes=vmem_limit,
            ),
        )(ids_pad, self.embedding_table_f32, self.wih_t, self.whh_t,
          self.bias_kernel, h_pad, c_pad)

    def forward(self, batch_size, input_data, hidden, cell):
        B, H = batch_size, self.hidden_dims
        # Batch tile: multiple of 8 sublanes (f32), capped at 128 rows per tile.
        TB = min(128, max(8, _round_up(B, 8)))
        B_pad = _round_up(max(B, TB), TB)

        ids = jnp.asarray(input_data, jnp.int32).reshape(B)
        ids_pad = jnp.zeros((B_pad,), jnp.int32).at[:B].set(ids)    # pad id 0 -> zero row
        h_pad = jnp.zeros((B_pad, H), jnp.float32).at[:B].set(hidden[0])
        c_pad = jnp.zeros((B_pad, H), jnp.float32).at[:B].set(cell[0])

        hc = self._fused_call(ids_pad, h_pad, c_pad, TB)            # (B_pad, 2H)
        h_new = hc[:B, :H]
        c_new = hc[:B, H:]
        # seq_len == 1 -> output == hidden (matches PyTorch return values).
        return h_new[None], h_new[None], c_new[None]


# --------------------------- reference (pure JAX) ------------------------------
def _reference_forward(enc, batch_size, input_data, hidden, cell):
    emb = jnp.take(enc.embedding_table_f32, input_data, axis=0)
    output = emb.reshape(1, batch_size, -1)
    H = enc.hidden_dims
    for _ in range(enc.num_layers):
        x, h, c = output[0], hidden[0], cell[0]
        gates = x @ enc.w_ih.T + h @ enc.w_hh.T + enc.bias_master
        i = jax.nn.sigmoid(gates[:, 0 * H:1 * H])
        f = jax.nn.sigmoid(gates[:, 1 * H:2 * H])
        g = jnp.tanh(gates[:, 2 * H:3 * H])
        o = jax.nn.sigmoid(gates[:, 3 * H:4 * H])
        c_new = f * c + i * g
        h_new = o * jnp.tanh(c_new)
        output, hidden, cell = h_new[None], h_new[None], c_new[None]
    return output, hidden, cell


# ---------------------------------- main ---------------------------------------
if __name__ == "__main__":
    key = jax.random.PRNGKey(0)
    k_params, k_state, k_ids = jax.random.split(key, 3)

    vocab_size = 16
    embedding_dims = 32
    hidden_dims = 32
    num_layers = 2
    batch_size = 2

    input_ids = jax.random.randint(k_ids, (batch_size,), 0, vocab_size, dtype=jnp.int32)

    # --- f32 parameters: tight check against the pure-JAX reference.
    enc = LSTMEncoderPallas(vocab_size, embedding_dims, hidden_dims, num_layers,
                            k_params, param_dtype=jnp.float32)
    hidden0, cell0 = enc.initialize_hidden_plus_cell(batch_size, k_state)

    output, hidden, cell = enc.forward(batch_size, input_ids, hidden0, cell0)
    jax.block_until_ready((output, hidden, cell))

    ref_out, ref_h, ref_c = _reference_forward(enc, batch_size, input_ids, hidden0, cell0)
    assert output.shape == (1, batch_size, hidden_dims)
    assert hidden.shape == (1, batch_size, hidden_dims)
    assert cell.shape == (1, batch_size, hidden_dims)
    assert jnp.allclose(output, ref_out, atol=1e-4, rtol=1e-4)
    assert jnp.allclose(hidden, ref_h, atol=1e-4, rtol=1e-4)
    assert jnp.allclose(cell, ref_c, atol=1e-4, rtol=1e-4)

    # --- bf16 LSTM weights (MXU operands bf16, accumulation + gate math f32):
    #     halves weight DMA bytes on all generations; looser tolerance applies.
    enc_bf16 = LSTMEncoderPallas(vocab_size, embedding_dims, hidden_dims, num_layers,
                                 k_params, param_dtype=jnp.bfloat16)
    out_bf, hid_bf, cel_bf = enc_bf16.forward(batch_size, input_ids, hidden0, cell0)
    jax.block_until_ready((out_bf, hid_bf, cel_bf))
    ref_out2, ref_h2, ref_c2 = _reference_forward(enc_bf16, batch_size, input_ids,
                                                  hidden0, cell0)
    assert jnp.allclose(out_bf, ref_out2, atol=3e-2, rtol=3e-2)
    assert jnp.allclose(hid_bf, ref_h2, atol=3e-2, rtol=3e-2)
    assert jnp.allclose(cel_bf, ref_c2, atol=3e-2, rtol=3e-2)

    print("KERNEL_OK")
</pallas_src>

<mosaic_0001>
module attributes {stable_mosaic.version = 11 : i64} {
  func.func @fused_lstm_encoder_kernel(%arg0: i32, %arg1: memref<8xi32, #tpu.memory_space<smem>>, %arg2: memref<16x32xf32, #tpu.memory_space<any>>, %arg3: memref<32x128xf32, #tpu.memory_space<vmem>>, %arg4: memref<32x128xf32, #tpu.memory_space<vmem>>, %arg5: memref<1x128xf32, #tpu.memory_space<vmem>>, %arg6: memref<8x32xf32, #tpu.memory_space<vmem>>, %arg7: memref<8x32xf32, #tpu.memory_space<vmem>>, %arg8: memref<8x64xf32, #tpu.memory_space<vmem>>, %arg9: memref<8x32xf32, #tpu.memory_space<vmem>>, %arg10: memref<8x!tpu.dma_semaphore, #tpu.memory_space<semaphore_mem>>) attributes {dimension_semantics = [#tpu.dimension_semantics<parallel>], iteration_bounds = array<i64: 1>, scalar_prefetch = 1 : i64, scratch_operands = 2 : i64, tpu.core_type = #tpu.core_type<tc>, window_params = [{}, {pipeline_mode = #tpu.pipeline_mode<synchronous>, transform_indices = @transform_1, window_bounds = array<i64: 32, 128>}, {pipeline_mode = #tpu.pipeline_mode<synchronous>, transform_indices = @transform_2, window_bounds = array<i64: 32, 128>}, {pipeline_mode = #tpu.pipeline_mode<synchronous>, transform_indices = @transform_3, window_bounds = array<i64: 1, 128>}, {transform_indices = @transform_4, window_bounds = array<i64: 8, 32>}, {transform_indices = @transform_5, window_bounds = array<i64: 8, 32>}, {transform_indices = @transform_6, window_bounds = array<i64: 8, 64>}]} {
    %c8_i32 = arith.constant 8 : i32
    %0 = arith.muli %arg0, %c8_i32 : i32
    %c0_i32 = arith.constant 0 : i32
    %1 = arith.addi %0, %c0_i32 : i32
    %2 = arith.index_cast %1 : i32 to index
    %3 = memref.load %arg1[%2] : memref<8xi32, #tpu.memory_space<smem>>
    %c0_i32_0 = arith.constant 0 : i32
    %c0_i32_1 = arith.constant 0 : i32
    %4 = tpu.memref_slice %arg2[%3, %c0_i32_1] : memref<16x32xf32, #tpu.memory_space<any>> -> memref<1x32xf32, #tpu.memory_space<any>>
    %c0_i32_2 = arith.constant 0 : i32
    %c0_i32_3 = arith.constant 0 : i32
    %5 = tpu.memref_slice %arg9[%c0_i32_2, %c0_i32_3] : memref<8x32xf32, #tpu.memory_space<vmem>> -> memref<1x32xf32, #tpu.memory_space<vmem>>
    %6 = tpu.memref_slice %arg10[%c0_i32_0] : memref<8x!tpu.dma_semaphore, #tpu.memory_space<semaphore_mem>> -> memref<1x!tpu.dma_semaphore, #tpu.memory_space<semaphore_mem>>
    %7 = tpu.memref_squeeze %6 : memref<1x!tpu.dma_semaphore, #tpu.memory_space<semaphore_mem>> -> memref<!tpu.dma_semaphore, #tpu.memory_space<semaphore_mem>>
    tpu.enqueue_dma source(%4 : memref<1x32xf32, #tpu.memory_space<any>>) target(%5 : memref<1x32xf32, #tpu.memory_space<vmem>>) target_semaphore(%7 : memref<!tpu.dma_semaphore, #tpu.memory_space<semaphore_mem>>)
    %c1_i32 = arith.constant 1 : i32
    %8 = arith.addi %0, %c1_i32 : i32
    %9 = arith.index_cast %8 : i32 to index
    %10 = memref.load %arg1[%9] : memref<8xi32, #tpu.memory_space<smem>>
    %c1_i32_4 = arith.constant 1 : i32
    %c0_i32_5 = arith.constant 0 : i32
    %11 = tpu.memref_slice %arg2[%10, %c0_i32_5] : memref<16x32xf32, #tpu.memory_space<any>> -> memref<1x32xf32, #tpu.memory_space<any>>
    %c1_i32_6 = arith.constant 1 : i32
    %c0_i32_7 = arith.constant 0 : i32
    %12 = tpu.memref_slice %arg9[%c1_i32_6, %c0_i32_7] : memref<8x32xf32, #tpu.memory_space<vmem>> -> memref<1x32xf32, #tpu.memory_space<vmem>>
    %13 = tpu.memref_slice %arg10[%c1_i32_4] : memref<8x!tpu.dma_semaphore, #tpu.memory_space<semaphore_mem>> -> memref<1x!tpu.dma_semaphore, #tpu.memory_space<semaphore_mem>>
    %14 = tpu.memref_squeeze %13 : memref<1x!tpu.dma_semaphore, #tpu.memory_space<semaphore_mem>> -> memref<!tpu.dma_semaphore, #tpu.memory_space<semaphore_mem>>
    tpu.enqueue_dma source(%11 : memref<1x32xf32, #tpu.memory_space<any>>) target(%12 : memref<1x32xf32, #tpu.memory_space<vmem>>) target_semaphore(%14 : memref<!tpu.dma_semaphore, #tpu.memory_space<semaphore_mem>>)
    %c2_i32 = arith.constant 2 : i32
    %15 = arith.addi %0, %c2_i32 : i32
    %16 = arith.index_cast %15 : i32 to index
    %17 = memref.load %arg1[%16] : memref<8xi32, #tpu.memory_space<smem>>
    %c2_i32_8 = arith.constant 2 : i32
    %c0_i32_9 = arith.constant 0 : i32
    %18 = tpu.memref_slice %arg2[%17, %c0_i32_9] : memref<16x32xf32, #tpu.memory_space<any>> -> memref<1x32xf32, #tpu.memory_space<any>>
    %c2_i32_10 = arith.constant 2 : i32
    %c0_i32_11 = arith.constant 0 : i32
    %19 = tpu.memref_slice %arg9[%c2_i32_10, %c0_i32_11] : memref<8x32xf32, #tpu.memory_space<vmem>> -> memref<1x32xf32, #tpu.memory_space<vmem>>
    %20 = tpu.memref_slice %arg10[%c2_i32_8] : memref<8x!tpu.dma_semaphore, #tpu.memory_space<semaphore_mem>> -> memref<1x!tpu.dma_semaphore, #tpu.memory_space<semaphore_mem>>
    %21 = tpu.memref_squeeze %20 : memref<1x!tpu.dma_semaphore, #tpu.memory_space<semaphore_mem>> -> memref<!tpu.dma_semaphore, #tpu.memory_space<semaphore_mem>>
    tpu.enqueue_dma source(%18 : memref<1x32xf32, #tpu.memory_space<any>>) target(%19 : memref<1x32xf32, #tpu.memory_space<vmem>>) target_semaphore(%21 : memref<!tpu.dma_semaphore, #tpu.memory_space<semaphore_mem>>)
    %c3_i32 = arith.constant 3 : i32
    %22 = arith.addi %0, %c3_i32 : i32
    %23 = arith.index_cast %22 : i32 to index
    %24 = memref.load %arg1[%23] : memref<8xi32, #tpu.memory_space<smem>>
    %c3_i32_12 = arith.constant 3 : i32
    %c0_i32_13 = arith.constant 0 : i32
    %25 = tpu.memref_slice %arg2[%24, %c0_i32_13] : memref<16x32xf32, #tpu.memory_space<any>> -> memref<1x32xf32, #tpu.memory_space<any>>
    %c3_i32_14 = arith.constant 3 : i32
    %c0_i32_15 = arith.constant 0 : i32
    %26 = tpu.memref_slice %arg9[%c3_i32_14, %c0_i32_15] : memref<8x32xf32, #tpu.memory_space<vmem>> -> memref<1x32xf32, #tpu.memory_space<vmem>>
    %27 = tpu.memref_slice %arg10[%c3_i32_12] : memref<8x!tpu.dma_semaphore, #tpu.memory_space<semaphore_mem>> -> memref<1x!tpu.dma_semaphore, #tpu.memory_space<semaphore_mem>>
    %28 = tpu.memref_squeeze %27 : memref<1x!tpu.dma_semaphore, #tpu.memory_space<semaphore_mem>> -> memref<!tpu.dma_semaphore, #tpu.memory_space<semaphore_mem>>
    tpu.enqueue_dma source(%25 : memref<1x32xf32, #tpu.memory_space<any>>) target(%26 : memref<1x32xf32, #tpu.memory_space<vmem>>) target_semaphore(%28 : memref<!tpu.dma_semaphore, #tpu.memory_space<semaphore_mem>>)
    %c4_i32 = arith.constant 4 : i32
    %29 = arith.addi %0, %c4_i32 : i32
    %30 = arith.index_cast %29 : i32 to index
    %31 = memref.load %arg1[%30] : memref<8xi32, #tpu.memory_space<smem>>
    %c4_i32_16 = arith.constant 4 : i32
    %c0_i32_17 = arith.constant 0 : i32
    %32 = tpu.memref_slice %arg2[%31, %c0_i32_17] : memref<16x32xf32, #tpu.memory_space<any>> -> memref<1x32xf32, #tpu.memory_space<any>>
    %c4_i32_18 = arith.constant 4 : i32
    %c0_i32_19 = arith.constant 0 : i32
    %33 = tpu.memref_slice %arg9[%c4_i32_18, %c0_i32_19] : memref<8x32xf32, #tpu.memory_space<vmem>> -> memref<1x32xf32, #tpu.memory_space<vmem>>
    %34 = tpu.memref_slice %arg10[%c4_i32_16] : memref<8x!tpu.dma_semaphore, #tpu.memory_space<semaphore_mem>> -> memref<1x!tpu.dma_semaphore, #tpu.memory_space<semaphore_mem>>
    %35 = tpu.memref_squeeze %34 : memref<1x!tpu.dma_semaphore, #tpu.memory_space<semaphore_mem>> -> memref<!tpu.dma_semaphore, #tpu.memory_space<semaphore_mem>>
    tpu.enqueue_dma source(%32 : memref<1x32xf32, #tpu.memory_space<any>>) target(%33 : memref<1x32xf32, #tpu.memory_space<vmem>>) target_semaphore(%35 : memref<!tpu.dma_semaphore, #tpu.memory_space<semaphore_mem>>)
    %c5_i32 = arith.constant 5 : i32
    %36 = arith.addi %0, %c5_i32 : i32
    %37 = arith.index_cast %36 : i32 to index
    %38 = memref.load %arg1[%37] : memref<8xi32, #tpu.memory_space<smem>>
    %c5_i32_20 = arith.constant 5 : i32
    %c0_i32_21 = arith.constant 0 : i32
    %39 = tpu.memref_slice %arg2[%38, %c0_i32_21] : memref<16x32xf32, #tpu.memory_space<any>> -> memref<1x32xf32, #tpu.memory_space<any>>
    %c5_i32_22 = arith.constant 5 : i32
    %c0_i32_23 = arith.constant 0 : i32
    %40 = tpu.memref_slice %arg9[%c5_i32_22, %c0_i32_23] : memref<8x32xf32, #tpu.memory_space<vmem>> -> memref<1x32xf32, #tpu.memory_space<vmem>>
    %41 = tpu.memref_slice %arg10[%c5_i32_20] : memref<8x!tpu.dma_semaphore, #tpu.memory_space<semaphore_mem>> -> memref<1x!tpu.dma_semaphore, #tpu.memory_space<semaphore_mem>>
    %42 = tpu.memref_squeeze %41 : memref<1x!tpu.dma_semaphore, #tpu.memory_space<semaphore_mem>> -> memref<!tpu.dma_semaphore, #tpu.memory_space<semaphore_mem>>
    tpu.enqueue_dma source(%39 : memref<1x32xf32, #tpu.memory_space<any>>) target(%40 : memref<1x32xf32, #tpu.memory_space<vmem>>) target_semaphore(%42 : memref<!tpu.dma_semaphore, #tpu.memory_space<semaphore_mem>>)
    %c6_i32 = arith.constant 6 : i32
    %43 = arith.addi %0, %c6_i32 : i32
    %44 = arith.index_cast %43 : i32 to index
    %45 = memref.load %arg1[%44] : memref<8xi32, #tpu.memory_space<smem>>
    %c6_i32_24 = arith.constant 6 : i32
    %c0_i32_25 = arith.constant 0 : i32
    %46 = tpu.memref_slice %arg2[%45, %c0_i32_25] : memref<16x32xf32, #tpu.memory_space<any>> -> memref<1x32xf32, #tpu.memory_space<any>>
    %c6_i32_26 = arith.constant 6 : i32
    %c0_i32_27 = arith.constant 0 : i32
    %47 = tpu.memref_slice %arg9[%c6_i32_26, %c0_i32_27] : memref<8x32xf32, #tpu.memory_space<vmem>> -> memref<1x32xf32, #tpu.memory_space<vmem>>
    %48 = tpu.memref_slice %arg10[%c6_i32_24] : memref<8x!tpu.dma_semaphore, #tpu.memory_space<semaphore_mem>> -> memref<1x!tpu.dma_semaphore, #tpu.memory_space<semaphore_mem>>
    %49 = tpu.memref_squeeze %48 : memref<1x!tpu.dma_semaphore, #tpu.memory_space<semaphore_mem>> -> memref<!tpu.dma_semaphore, #tpu.memory_space<semaphore_mem>>
    tpu.enqueue_dma source(%46 : memref<1x32xf32, #tpu.memory_space<any>>) target(%47 : memref<1x32xf32, #tpu.memory_space<vmem>>) target_semaphore(%49 : memref<!tpu.dma_semaphore, #tpu.memory_space<semaphore_mem>>)
    %c7_i32 = arith.constant 7 : i32
    %50 = arith.addi %0, %c7_i32 : i32
    %51 = arith.index_cast %50 : i32 to index
    %52 = memref.load %arg1[%51] : memref<8xi32, #tpu.memory_space<smem>>
    %c7_i32_28 = arith.constant 7 : i32
    %c0_i32_29 = arith.constant 0 : i32
    %53 = tpu.memref_slice %arg2[%52, %c0_i32_29] : memref<16x32xf32, #tpu.memory_space<any>> -> memref<1x32xf32, #tpu.memory_space<any>>
    %c7_i32_30 = arith.constant 7 : i32
    %c0_i32_31 = arith.constant 0 : i32
    %54 = tpu.memref_slice %arg9[%c7_i32_30, %c0_i32_31] : memref<8x32xf32, #tpu.memory_space<vmem>> -> memref<1x32xf32, #tpu.memory_space<vmem>>
    %55 = tpu.memref_slice %arg10[%c7_i32_28] : memref<8x!tpu.dma_semaphore, #tpu.memory_space<semaphore_mem>> -> memref<1x!tpu.dma_semaphore, #tpu.memory_space<semaphore_mem>>
    %56 = tpu.memref_squeeze %55 : memref<1x!tpu.dma_semaphore, #tpu.memory_space<semaphore_mem>> -> memref<!tpu.dma_semaphore, #tpu.memory_space<semaphore_mem>>
    tpu.enqueue_dma source(%53 : memref<1x32xf32, #tpu.memory_space<any>>) target(%54 : memref<1x32xf32, #tpu.memory_space<vmem>>) target_semaphore(%56 : memref<!tpu.dma_semaphore, #tpu.memory_space<semaphore_mem>>)
    %c0_i32_32 = arith.constant 0 : i32
    %57 = arith.addi %0, %c0_i32_32 : i32
    %58 = arith.index_cast %57 : i32 to index
    %59 = memref.load %arg1[%58] : memref<8xi32, #tpu.memory_space<smem>>
    %c0_i32_33 = arith.constant 0 : i32
    %c0_i32_34 = arith.constant 0 : i32
    %60 = tpu.memref_slice %arg2[%59, %c0_i32_34] : memref<16x32xf32, #tpu.memory_space<any>> -> memref<1x32xf32, #tpu.memory_space<any>>
    %c0_i32_35 = arith.constant 0 : i32
    %c0_i32_36 = arith.constant 0 : i32
    %61 = tpu.memref_slice %arg9[%c0_i32_35, %c0_i32_36] : memref<8x32xf32, #tpu.memory_space<vmem>> -> memref<1x32xf32, #tpu.memory_space<vmem>>
    %62 = tpu.memref_slice %arg10[%c0_i32_33] : memref<8x!tpu.dma_semaphore, #tpu.memory_space<semaphore_mem>> -> memref<1x!tpu.dma_semaphore, #tpu.memory_space<semaphore_mem>>
    %63 = tpu.memref_squeeze %62 : memref<1x!tpu.dma_semaphore, #tpu.memory_space<semaphore_mem>> -> memref<!tpu.dma_semaphore, #tpu.memory_space<semaphore_mem>>
    tpu.wait_dma2 semaphore(%63 : memref<!tpu.dma_semaphore, #tpu.memory_space<semaphore_mem>>) src(%60 : memref<1x32xf32, #tpu.memory_space<any>>) dst(%61 : memref<1x32xf32, #tpu.memory_space<vmem>>)
    %c1_i32_37 = arith.constant 1 : i32
    %64 = arith.addi %0, %c1_i32_37 : i32
    %65 = arith.index_cast %64 : i32 to index
    %66 = memref.load %arg1[%65] : memref<8xi32, #tpu.memory_space<smem>>
    %c1_i32_38 = arith.constant 1 : i32
    %c0_i32_39 = arith.constant 0 : i32
    %67 = tpu.memref_slice %arg2[%66, %c0_i32_39] : memref<16x32xf32, #tpu.memory_space<any>> -> memref<1x32xf32, #tpu.memory_space<any>>
    %c1_i32_40 = arith.constant 1 : i32
    %c0_i32_41 = arith.constant 0 : i32
    %68 = tpu.memref_slice %arg9[%c1_i32_40, %c0_i32_41] : memref<8x32xf32, #tpu.memory_space<vmem>> -> memref<1x32xf32, #tpu.memory_space<vmem>>
    %69 = tpu.memref_slice %arg10[%c1_i32_38] : memref<8x!tpu.dma_semaphore, #tpu.memory_space<semaphore_mem>> -> memref<1x!tpu.dma_semaphore, #tpu.memory_space<semaphore_mem>>
    %70 = tpu.memref_squeeze %69 : memref<1x!tpu.dma_semaphore, #tpu.memory_space<semaphore_mem>> -> memref<!tpu.dma_semaphore, #tpu.memory_space<semaphore_mem>>
    tpu.wait_dma2 semaphore(%70 : memref<!tpu.dma_semaphore, #tpu.memory_space<semaphore_mem>>) src(%67 : memref<1x32xf32, #tpu.memory_space<any>>) dst(%68 : memref<1x32xf32, #tpu.memory_space<vmem>>)
    %c2_i32_42 = arith.constant 2 : i32
    %71 = arith.addi %0, %c2_i32_42 : i32
    %72 = arith.index_cast %71 : i32 to index
    %73 = memref.load %arg1[%72] : memref<8xi32, #tpu.memory_space<smem>>
    %c2_i32_43 = arith.constant 2 : i32
    %c0_i32_44 = arith.constant 0 : i32
    %74 = tpu.memref_slice %arg2[%73, %c0_i32_44] : memref<16x32xf32, #tpu.memory_space<any>> -> memref<1x32xf32, #tpu.memory_space<any>>
    %c2_i32_45 = arith.constant 2 : i32
    %c0_i32_46 = arith.constant 0 : i32
    %75 = tpu.memref_slice %arg9[%c2_i32_45, %c0_i32_46] : memref<8x32xf32, #tpu.memory_space<vmem>> -> memref<1x32xf32, #tpu.memory_space<vmem>>
    %76 = tpu.memref_slice %arg10[%c2_i32_43] : memref<8x!tpu.dma_semaphore, #tpu.memory_space<semaphore_mem>> -> memref<1x!tpu.dma_semaphore, #tpu.memory_space<semaphore_mem>>
    %77 = tpu.memref_squeeze %76 : memref<1x!tpu.dma_semaphore, #tpu.memory_space<semaphore_mem>> -> memref<!tpu.dma_semaphore, #tpu.memory_space<semaphore_mem>>
    tpu.wait_dma2 semaphore(%77 : memref<!tpu.dma_semaphore, #tpu.memory_space<semaphore_mem>>) src(%74 : memref<1x32xf32, #tpu.memory_space<any>>) dst(%75 : memref<1x32xf32, #tpu.memory_space<vmem>>)
    %c3_i32_47 = arith.constant 3 : i32
    %78 = arith.addi %0, %c3_i32_47 : i32
    %79 = arith.index_cast %78 : i32 to index
    %80 = memref.load %arg1[%79] : memref<8xi32, #tpu.memory_space<smem>>
    %c3_i32_48 = arith.constant 3 : i32
    %c0_i32_49 = arith.constant 0 : i32
    %81 = tpu.memref_slice %arg2[%80, %c0_i32_49] : memref<16x32xf32, #tpu.memory_space<any>> -> memref<1x32xf32, #tpu.memory_space<any>>
    %c3_i32_50 = arith.constant 3 : i32
    %c0_i32_51 = arith.constant 0 : i32
    %82 = tpu.memref_slice %arg9[%c3_i32_50, %c0_i32_51] : memref<8x32xf32, #tpu.memory_space<vmem>> -> memref<1x32xf32, #tpu.memory_space<vmem>>
    %83 = tpu.memref_slice %arg10[%c3_i32_48] : memref<8x!tpu.dma_semaphore, #tpu.memory_space<semaphore_mem>> -> memref<1x!tpu.dma_semaphore, #tpu.memory_space<semaphore_mem>>
    %84 = tpu.memref_squeeze %83 : memref<1x!tpu.dma_semaphore, #tpu.memory_space<semaphore_mem>> -> memref<!tpu.dma_semaphore, #tpu.memory_space<semaphore_mem>>
    tpu.wait_dma2 semaphore(%84 : memref<!tpu.dma_semaphore, #tpu.memory_space<semaphore_mem>>) src(%81 : memref<1x32xf32, #tpu.memory_space<any>>) dst(%82 : memref<1x32xf32, #tpu.memory_space<vmem>>)
    %c4_i32_52 = arith.constant 4 : i32
    %85 = arith.addi %0, %c4_i32_52 : i32
    %86 = arith.index_cast %85 : i32 to index
    %87 = memref.load %arg1[%86] : memref<8xi32, #tpu.memory_space<smem>>
    %c4_i32_53 = arith.constant 4 : i32
    %c0_i32_54 = arith.constant 0 : i32
    %88 = tpu.memref_slice %arg2[%87, %c0_i32_54] : memref<16x32xf32, #tpu.memory_space<any>> -> memref<1x32xf32, #tpu.memory_space<any>>
    %c4_i32_55 = arith.constant 4 : i32
    %c0_i32_56 = arith.constant 0 : i32
    %89 = tpu.memref_slice %arg9[%c4_i32_55, %c0_i32_56] : memref<8x32xf32, #tpu.memory_space<vmem>> -> memref<1x32xf32, #tpu.memory_space<vmem>>
    %90 = tpu.memref_slice %arg10[%c4_i32_53] : memref<8x!tpu.dma_semaphore, #tpu.memory_space<semaphore_mem>> -> memref<1x!tpu.dma_semaphore, #tpu.memory_space<semaphore_mem>>
    %91 = tpu.memref_squeeze %90 : memref<1x!tpu.dma_semaphore, #tpu.memory_space<semaphore_mem>> -> memref<!tpu.dma_semaphore, #tpu.memory_space<semaphore_mem>>
    tpu.wait_dma2 semaphore(%91 : memref<!tpu.dma_semaphore, #tpu.memory_space<semaphore_mem>>) src(%88 : memref<1x32xf32, #tpu.memory_space<any>>) dst(%89 : memref<1x32xf32, #tpu.memory_space<vmem>>)
    %c5_i32_57 = arith.constant 5 : i32
    %92 = arith.addi %0, %c5_i32_57 : i32
    %93 = arith.index_cast %92 : i32 to index
    %94 = memref.load %arg1[%93] : memref<8xi32, #tpu.memory_space<smem>>
    %c5_i32_58 = arith.constant 5 : i32
    %c0_i32_59 = arith.constant 0 : i32
    %95 = tpu.memref_slice %arg2[%94, %c0_i32_59] : memref<16x32xf32, #tpu.memory_space<any>> -> memref<1x32xf32, #tpu.memory_space<any>>
    %c5_i32_60 = arith.constant 5 : i32
    %c0_i32_61 = arith.constant 0 : i32
    %96 = tpu.memref_slice %arg9[%c5_i32_60, %c0_i32_61] : memref<8x32xf32, #tpu.memory_space<vmem>> -> memref<1x32xf32, #tpu.memory_space<vmem>>
    %97 = tpu.memref_slice %arg10[%c5_i32_58] : memref<8x!tpu.dma_semaphore, #tpu.memory_space<semaphore_mem>> -> memref<1x!tpu.dma_semaphore, #tpu.memory_space<semaphore_mem>>
    %98 = tpu.memref_squeeze %97 : memref<1x!tpu.dma_semaphore, #tpu.memory_space<semaphore_mem>> -> memref<!tpu.dma_semaphore, #tpu.memory_space<semaphore_mem>>
    tpu.wait_dma2 semaphore(%98 : memref<!tpu.dma_semaphore, #tpu.memory_space<semaphore_mem>>) src(%95 : memref<1x32xf32, #tpu.memory_space<any>>) dst(%96 : memref<1x32xf32, #tpu.memory_space<vmem>>)
    %c6_i32_62 = arith.constant 6 : i32
    %99 = arith.addi %0, %c6_i32_62 : i32
    %100 = arith.index_cast %99 : i32 to index
    %101 = memref.load %arg1[%100] : memref<8xi32, #tpu.memory_space<smem>>
    %c6_i32_63 = arith.constant 6 : i32
    %c0_i32_64 = arith.constant 0 : i32
    %102 = tpu.memref_slice %arg2[%101, %c0_i32_64] : memref<16x32xf32, #tpu.memory_space<any>> -> memref<1x32xf32, #tpu.memory_space<any>>
    %c6_i32_65 = arith.constant 6 : i32
    %c0_i32_66 = arith.constant 0 : i32
    %103 = tpu.memref_slice %arg9[%c6_i32_65, %c0_i32_66] : memref<8x32xf32, #tpu.memory_space<vmem>> -> memref<1x32xf32, #tpu.memory_space<vmem>>
    %104 = tpu.memref_slice %arg10[%c6_i32_63] : memref<8x!tpu.dma_semaphore, #tpu.memory_space<semaphore_mem>> -> memref<1x!tpu.dma_semaphore, #tpu.memory_space<semaphore_mem>>
    %105 = tpu.memref_squeeze %104 : memref<1x!tpu.dma_semaphore, #tpu.memory_space<semaphore_mem>> -> memref<!tpu.dma_semaphore, #tpu.memory_space<semaphore_mem>>
    tpu.wait_dma2 semaphore(%105 : memref<!tpu.dma_semaphore, #tpu.memory_space<semaphore_mem>>) src(%102 : memref<1x32xf32, #tpu.memory_space<any>>) dst(%103 : memref<1x32xf32, #tpu.memory_space<vmem>>)
    %c7_i32_67 = arith.constant 7 : i32
    %106 = arith.addi %0, %c7_i32_67 : i32
    %107 = arith.index_cast %106 : i32 to index
    %108 = memref.load %arg1[%107] : memref<8xi32, #tpu.memory_space<smem>>
    %c7_i32_68 = arith.constant 7 : i32
    %c0_i32_69 = arith.constant 0 : i32
    %109 = tpu.memref_slice %arg2[%108, %c0_i32_69] : memref<16x32xf32, #tpu.memory_space<any>> -> memref<1x32xf32, #tpu.memory_space<any>>
    %c7_i32_70 = arith.constant 7 : i32
    %c0_i32_71 = arith.constant 0 : i32
    %110 = tpu.memref_slice %arg9[%c7_i32_70, %c0_i32_71] : memref<8x32xf32, #tpu.memory_space<vmem>> -> memref<1x32xf32, #tpu.memory_space<vmem>>
    %111 = tpu.memref_slice %arg10[%c7_i32_68] : memref<8x!tpu.dma_semaphore, #tpu.memory_space<semaphore_mem>> -> memref<1x!tpu.dma_semaphore, #tpu.memory_space<semaphore_mem>>
    %112 = tpu.memref_squeeze %111 : memref<1x!tpu.dma_semaphore, #tpu.memory_space<semaphore_mem>> -> memref<!tpu.dma_semaphore, #tpu.memory_space<semaphore_mem>>
    tpu.wait_dma2 semaphore(%112 : memref<!tpu.dma_semaphore, #tpu.memory_space<semaphore_mem>>) src(%109 : memref<1x32xf32, #tpu.memory_space<any>>) dst(%110 : memref<1x32xf32, #tpu.memory_space<vmem>>)
    %c0 = arith.constant 0 : index
    %c0_72 = arith.constant 0 : index
    %113 = vector.load %arg3[%c0, %c0_72] : memref<32x128xf32, #tpu.memory_space<vmem>>, vector<32x128xf32>
    %c0_73 = arith.constant 0 : index
    %c0_74 = arith.constant 0 : index
    %114 = vector.load %arg4[%c0_73, %c0_74] : memref<32x128xf32, #tpu.memory_space<vmem>>, vector<32x128xf32>
    %c0_75 = arith.constant 0 : index
    %c0_76 = arith.constant 0 : index
    %115 = vector.load %arg3[%c0_75, %c0_76] : memref<32x128xf32, #tpu.memory_space<vmem>>, vector<32x128xf32>
    %c0_77 = arith.constant 0 : index
    %c0_78 = arith.constant 0 : index
    %116 = vector.load %arg4[%c0_77, %c0_78] : memref<32x128xf32, #tpu.memory_space<vmem>>, vector<32x128xf32>
    %117 = arith.addf %115, %116 : vector<32x128xf32>
    %c0_79 = arith.constant 0 : index
    %c0_80 = arith.constant 0 : index
    %118 = vector.load %arg5[%c0_79, %c0_80] : memref<1x128xf32, #tpu.memory_space<vmem>>, vector<1x128xf32>
    %119 = vector.shape_cast %118 : vector<1x128xf32> to vector<1x128xf32>
    %120 = vector.broadcast %119 : vector<1x128xf32> to vector<8x128xf32>
    %c0_81 = arith.constant 0 : index
    %c0_82 = arith.constant 0 : index
    %121 = vector.load %arg9[%c0_81, %c0_82] : memref<8x32xf32, #tpu.memory_space<vmem>>, vector<8x32xf32>
    %c0_83 = arith.constant 0 : index
    %c0_84 = arith.constant 0 : index
    %122 = vector.load %arg6[%c0_83, %c0_84] : memref<8x32xf32, #tpu.memory_space<vmem>>, vector<8x32xf32>
    %c0_85 = arith.constant 0 : index
    %c0_86 = arith.constant 0 : index
    %123 = vector.load %arg7[%c0_85, %c0_86] : memref<8x32xf32, #tpu.memory_space<vmem>>, vector<8x32xf32>
    %cst = arith.constant dense<0.000000e+00> : vector<8x128xf32>
    %124 = tpu.matmul %121, %113, %cst {dimension_numbers = #tpu.dot_dimension_numbers<[1], [0], [0], [1], [0, 0, 1, 1], [], []>} : vector<8x32xf32>, vector<32x128xf32>, vector<8x128xf32> -> vector<8x128xf32>
    %cst_87 = arith.constant dense<0.000000e+00> : vector<8x128xf32>
    %125 = tpu.matmul %122, %114, %cst_87 {dimension_numbers = #tpu.dot_dimension_numbers<[1], [0], [0], [1], [0, 0, 1, 1], [], []>} : vector<8x32xf32>, vector<32x128xf32>, vector<8x128xf32> -> vector<8x128xf32>
    %126 = arith.addf %124, %125 : vector<8x128xf32>
    %127 = arith.addf %126, %120 : vector<8x128xf32>
    %128 = vector.extract_strided_slice %127 {offsets = [0, 0], sizes = [8, 96], strides = [1, 1]} : vector<8x128xf32> to vector<8x96xf32>
    %129 = arith.negf %128 : vector<8x96xf32>
    %130 = math.exp %129 : vector<8x96xf32>
    %cst_88 = arith.constant 1.000000e+00 : f32
    %131 = vector.broadcast %cst_88 : f32 to vector<8x96xf32>
    %132 = arith.addf %131, %130 : vector<8x96xf32>
    %133 = arith.divf %131, %132 : vector<8x96xf32>
    %134 = vector.extract_strided_slice %133 {offsets = [0, 0], sizes = [8, 32], strides = [1, 1]} : vector<8x96xf32> to vector<8x32xf32>
    %135 = vector.extract_strided_slice %133 {offsets = [0, 32], sizes = [8, 32], strides = [1, 1]} : vector<8x96xf32> to vector<8x32xf32>
    %136 = vector.extract_strided_slice %133 {offsets = [0, 64], sizes = [8, 32], strides = [1, 1]} : vector<8x96xf32> to vector<8x32xf32>
    %137 = vector.extract_strided_slice %127 {offsets = [0, 96], sizes = [8, 32], strides = [1, 1]} : vector<8x128xf32> to vector<8x32xf32>
    %138 = math.tanh %137 : vector<8x32xf32>
    %139 = arith.mulf %135, %123 : vector<8x32xf32>
    %140 = arith.mulf %134, %138 : vector<8x32xf32>
    %141 = arith.addf %139, %140 : vector<8x32xf32>
    %142 = math.tanh %141 : vector<8x32xf32>
    %143 = arith.mulf %136, %142 : vector<8x32xf32>
    %c0_i32_89 = arith.constant 0 : i32
    %cst_90 = arith.constant dense<0.000000e+00> : vector<8x128xf32>
    %144 = tpu.matmul %143, %117, %cst_90 {dimension_numbers = #tpu.dot_dimension_numbers<[1], [0], [0], [1], [0, 0, 1, 1], [], []>} : vector<8x32xf32>, vector<32x128xf32>, vector<8x128xf32> -> vector<8x128xf32>
    %145 = arith.addf %144, %120 : vector<8x128xf32>
    %146 = vector.extract_strided_slice %145 {offsets = [0, 0], sizes = [8, 96], strides = [1, 1]} : vector<8x128xf32> to vector<8x96xf32>
    %147 = arith.negf %146 : vector<8x96xf32>
    %148 = math.exp %147 : vector<8x96xf32>
    %cst_91 = arith.constant 1.000000e+00 : f32
    %149 = vector.broadcast %cst_91 : f32 to vector<8x96xf32>
    %150 = arith.addf %149, %148 : vector<8x96xf32>
    %151 = arith.divf %149, %150 : vector<8x96xf32>
    %152 = vector.extract_strided_slice %151 {offsets = [0, 0], sizes = [8, 32], strides = [1, 1]} : vector<8x96xf32> to vector<8x32xf32>
    %153 = vector.extract_strided_slice %151 {offsets = [0, 32], sizes = [8, 32], strides = [1, 1]} : vector<8x96xf32> to vector<8x32xf32>
    %154 = vector.extract_strided_slice %151 {offsets = [0, 64], sizes = [8, 32], strides = [1, 1]} : vector<8x96xf32> to vector<8x32xf32>
    %155 = vector.extract_strided_slice %145 {offsets = [0, 96], sizes = [8, 32], strides = [1, 1]} : vector<8x128xf32> to vector<8x32xf32>
    %156 = math.tanh %155 : vector<8x32xf32>
    %157 = arith.mulf %153, %141 : vector<8x32xf32>
    %158 = arith.mulf %152, %156 : vector<8x32xf32>
    %159 = arith.addf %157, %158 : vector<8x32xf32>
    %160 = math.tanh %159 : vector<8x32xf32>
    %161 = arith.mulf %154, %160 : vector<8x32xf32>
    %c0_92 = arith.constant 0 : index
    %c0_93 = arith.constant 0 : index
    %162 = vector.load %arg8[%c0_92, %c0_93] : memref<8x64xf32, #tpu.memory_space<vmem>>, vector<8x32xf32>
    tpu.vector_store %arg8[%c0_92, %c0_93], %161 {strides = array<i32>} : memref<8x64xf32, #tpu.memory_space<vmem>>, vector<8x32xf32>,
    %c0_94 = arith.constant 0 : index
    %c32 = arith.constant 32 : index
    %163 = vector.load %arg8[%c0_94, %c32] : memref<8x64xf32, #tpu.memory_space<vmem>>, vector<8x32xf32>
    tpu.vector_store %arg8[%c0_94, %c32], %159 {strides = array<i32>} : memref<8x64xf32, #tpu.memory_space<vmem>>, vector<8x32xf32>,
    return
  }
  func.func @transform_1(%arg0: i32, %arg1: memref<8xi32, #tpu.memory_space<smem>>) -> (i32, i32) {
    %c0_i32 = arith.constant 0 : i32
    %c0_i32_0 = arith.constant 0 : i32
    %c0_i32_1 = arith.constant 0 : i32
    return %c0_i32, %c0_i32_0 : i32, i32
  }
  func.func @transform_2(%arg0: i32, %arg1: memref<8xi32, #tpu.memory_space<smem>>) -> (i32, i32) {
    %c0_i32 = arith.constant 0 : i32
    %c0_i32_0 = arith.constant 0 : i32
    %c0_i32_1 = arith.constant 0 : i32
    return %c0_i32, %c0_i32_0 : i32, i32
  }
  func.func @transform_3(%arg0: i32, %arg1: memref<8xi32, #tpu.memory_space<smem>>) -> (i32, i32) {
    %c0_i32 = arith.constant 0 : i32
    %c0_i32_0 = arith.constant 0 : i32
    %c0_i32_1 = arith.constant 0 : i32
    return %c0_i32, %c0_i32_0 : i32, i32
  }
  func.func @transform_4(%arg0: i32, %arg1: memref<8xi32, #tpu.memory_space<smem>>) -> (i32, i32) {
    %c0_i32 = arith.constant 0 : i32
    %c0_i32_0 = arith.constant 0 : i32
    return %arg0, %c0_i32 : i32, i32
  }
  func.func @transform_5(%arg0: i32, %arg1: memref<8xi32, #tpu.memory_space<smem>>) -> (i32, i32) {
    %c0_i32 = arith.constant 0 : i32
    %c0_i32_0 = arith.constant 0 : i32
    return %arg0, %c0_i32 : i32, i32
  }
  func.func @transform_6(%arg0: i32, %arg1: memref<8xi32, #tpu.memory_space<smem>>) -> (i32, i32) {
    %c0_i32 = arith.constant 0 : i32
    %c0_i32_0 = arith.constant 0 : i32
    return %arg0, %c0_i32 : i32, i32
  }
}

</mosaic_0001>

<bundles_post_ra>
// kernel: tpu_custom_call.1
= control target key start
LH: loop header
LB: loop body
LE: loop exit
PB: predicated region body
PF: predicated region fallthrough
CT: control target
= control target key end

     0   :  { %s1288_s0 = inlined_call_operand.hbm [shape: s32[8], index: 0, kind: input, shape index: {}]   ;;  %s1289_s1 = inlined_call_operand.hbm [shape: f32[16,32], index: 1, kind: input, shape index: {}]   ;;  %s1290_s2 = inlined_call_operand.hbm [shape: f32[32,128], index: 2, kind: input, shape index: {}]   ;;  %s1291_s3 = inlined_call_operand.hbm [shape: f32[32,128], index: 3, kind: input, shape index: {}]   ;;  %s1292_s4 = inlined_call_operand.vmem [shape: f32[1,128], index: 4, kind: input, shape index: {}]   ;;  %s1293_s5 = inlined_call_operand.vmem [shape: f32[8,32], index: 5, kind: input, shape index: {}]   ;;  %s1294_s6 = inlined_call_operand.vmem [shape: f32[8,32], index: 6, kind: input, shape index: {}]   ;;  %s1295_s7 = inlined_call_operand.hbm [shape: f32[8,64], index: 7, kind: output, shape index: {}]  }
   0x1   :  { %s735_s26 = scalar_lea.hbm %s1288_s0, 16 }
   0x2   :  { %p736_p0 = scmp.ne.s32.totalorder %s1288_s0, %s735_s26  ;;  %p739_p1 = scmp.lt.u32.totalorder %s735_s26, %s1288_s0 }
   0x4   :  { %p741_p2 = pnand %p739_p1, %p736_p0 }
   0x6   :  { %744 = shalt.err (!%p741_p2)  }
   0x7   :  { %s1027_s8 = smov [#allocation5]  }
   0x8   :  { %13 = dma.hbm_to_smem %s1288_s0, 16, %s1027_s8, [#allocation4] }
   0x9   :  { %1003 = dma.done.wait [#allocation4], 16 }
   0xa   :  { %1004 = vsyncadd [#allocation4], 4294967280 }
   0xb   :  { %15 = sfence }
   0xc   :  { %16 = vsyncpa [#allocation7], 0 }
   0xd   :  { %17 = vsyncpa [#allocation10], 0 }
   0xe   :  { %18 = vsyncpa [#allocation8], 0  ;;  %s1028_s11 = smov [#allocation6]   ;;  %s745_s15 = scalar_lea.hbm %s1290_s2, 512 }
   0xf   :  { %s24_s12 = sshll.u32 %s1028_s11, 4  ;;  %p746_p3 = scmp.ne.s32.totalorder %s1290_s2, %s745_s15  ;;  %s25_s12 = int_to_ptr.vmem [resolvable:$true] %s24_s12 }
  0x10   :  { %p749_p4 = scmp.lt.u32.totalorder %s745_s15, %s1290_s2 }
  0x12   :  { %p751_p5 = pnand %p749_p4, %p746_p3 }
  0x14   :  { %754 = shalt.err (!%p751_p5)
}
  0x15   :  { %s755_s0 = scalar_lea.vmem %s25_s12, 512  ;;  %p760_p7 = scmp.lt.s32.totalorder %s25_s12, %s25_s12 }
  0x16   :  { %p756_p6 = scmp.ne.s32.totalorder %s25_s12, %s755_s0  ;;  %p761_p8 = scmp.lt.s32.totalorder %s755_s0, %s755_s0 }
  0x18   :  { %p762_p9 = por %p761_p8, %p760_p7 }
  0x1a   :  { %p763_p10 = pnand %p762_p9, %p756_p6 }
  0x1c   :  { %766 = shalt.err (!%p763_p10)
}
  0x1d   :  { %s1029_s20 = smov 128   ;;  %s1030_s21 = smov 8  }
  0x1e   :  { %30 = dma.hbm_to_vmem [thread:$0]  %s1290_s2, 512, %s25_s12, [#allocation7], %s1029_s20, %s1029_s20, %s1030_s21  }
  0x1f   :  { %s1031_s24 = smov [#allocation9]   ;;  %s767_s28 = scalar_lea.hbm %s1291_s3, 512 }
  0x20   :  { %s36_s25 = sshll.u32 %s1031_s24, 4  ;;  %p768_p11 = scmp.ne.s32.totalorder %s1291_s3, %s767_s28  ;;  %s37_s25 = int_to_ptr.vmem [resolvable:$true] %s36_s25 }
  0x21   :  { %p771_p12 = scmp.lt.u32.totalorder %s767_s28, %s1291_s3 }
  0x23   :  { %p773_p13 = pnand %p771_p12, %p768_p11 }
  0x25   :  { %776 = shalt.err (!%p773_p13)
}
  0x26   :  { %s777_s10 = scalar_lea.vmem %s37_s25, 512  ;;  %p782_p1 = scmp.lt.s32.totalorder %s37_s25, %s37_s25 }
  0x27   :  { %p778_p0 = scmp.ne.s32.totalorder %s37_s25, %s777_s10  ;;  %p783_p2 = scmp.lt.s32.totalorder %s777_s10, %s777_s10 }
  0x29   :  { %p784_p3 = por %p783_p2, %p782_p1 }
  0x2b   :  { %p785_p4 = pnand %p784_p3, %p778_p0 }
  0x2d   :  { %788 = shalt.err (!%p785_p4)
}
  0x2e   :  { %42 = dma.hbm_to_vmem [thread:$0]  %s1291_s3, 512, %s37_s25, [#allocation10], %s1029_s20, %s1029_s20, %s1030_s21  }
  0x2f   :  { %1005 = dma.done.wait [#allocation7], 512  }
  0x30   :  { %1006 = vsyncadd [#allocation7], 4294966784 }
  0x31   :  { %1007 = dma.done.wait [#allocation10], 512  }
  0x32   :  { %1008 = vsyncadd [#allocation10], 4294966784  ;;  %s56_s12 = sld [smem:[#allocation5]]  ;;  %s1032_s13 = smov [#allocation2]  }
  0x33   :  { %s66_s14 = sshll.u32 %s1032_s13, 4  ;;  %s1124_s15 = sld [smem:[#allocation5 + $0x1]]  ;;  %s1122_s14 = int_to_ptr.vmem [resolvable:$true] %s66_s14 }
  0x34   :  { %s1033_s16 = smov [#allocation2 + $0x1]   ;;  %s1126_s18 = sld [smem:[#allocation5 + $0x2]] }
  0x35   :  { %s83_s17 = sshll.u32 %s1033_s16, 4  ;;  %s1034_s19 = smov [#allocation2 + $0x2]   ;;  %s1128_s17 = int_to_ptr.vmem [resolvable:$true] %s83_s17 }
  0x36   :  { %s100_s3 = sshll.u32 %s1034_s19, 4  ;;  %s1130_s0 = sld [smem:[#allocation5 + $0x3]]  ;;  %s1132_s3 = int_to_ptr.vmem [resolvable:$true] %s100_s3 }
  0x37   :  { %s1035_s21 = smov [#allocation2 + $0x3]   ;;  %s1143_s30 = scalar_lea.hbm %s1289_s1, 256 }
  0x38   :  { %s605_s20 = sshll.u32 %s56_s12, 4  ;;  %s1134_s22 = sshll.u32 %s1035_s21, 4  ;;  %s118_s22 = int_to_ptr.vmem [resolvable:$true] %s1134_s22 }
  0x39   :  { %s58_s25 = scalar_lea.hbm %s1289_s1, %s605_s20  ;;  %s607_s26 = sshll.u32 %s1124_s15, 4 }
  0x3a   :  { %s789_s27 = scalar_lea.hbm %s58_s25, 16  ;;  %p792_p6 = scmp.lt.u32.totalorder %s58_s25, %s1289_s1 }
  0x3b   :  { %p790_p5 = scmp.ne.s32.totalorder %s58_s25, %s789_s27  ;;  %p793_p7 = scmp.lt.u32.totalorder %s1143_s30, %s789_s27 }
  0x3c   :  { %p795_p9 = scmp.lt.u32.totalorder %s789_s27, %s58_s25 }
  0x3d   :  { %p794_p8 = por %p793_p7, %p792_p6 }
  0x3f   :  { %p796_p10 = por %p795_p9, %p794_p8 }
  0x41   :  { %p797_p11 = pnand %p796_p10, %p790_p5 }
  0x43   :  { %800 = shalt.err (!%p797_p11)  }
  0x44   :  { %s801_s10 = scalar_lea.vmem %s1122_s14, 16  ;;  %s1152_s2 = scalar_lea.vmem %s1122_s14, 128 }
  0x45   :  { %p802_p12 = scmp.ne.s32.totalorder %s1122_s14, %s801_s10  ;;  %p806_p13 = scmp.lt.s32.totalorder %s1122_s14, %s1122_s14 }
  0x46   :  { %p807_p0 = scmp.lt.s32.totalorder %s1152_s2, %s801_s10 }
  0x48   :  { %p808_p1 = por %p807_p0, %p806_p13 }
  0x4a   :  { %p809_p2 = pnand %p808_p1, %p802_p12 }
  0x4c   :  { %812 = shalt.err (!%p809_p2)  }
  0x4d   :  { %69 = dma.hbm_to_vmem [thread:$0]  %s58_s25, 16, %s1122_s14, [#allocation3] }
  0x4e   :  { %s73_s13 = scalar_lea.hbm %s1289_s1, %s607_s26  ;;  %s609_s15 = sshll.u32 %s1126_s18, 4 }
  0x4f   :  { %s813_s16 = scalar_lea.hbm %s73_s13, 16  ;;  %p816_p4 = scmp.lt.u32.totalorder %s73_s13, %s1289_s1 }
  0x50   :  { %p814_p3 = scmp.ne.s32.totalorder %s73_s13, %s813_s16  ;;  %p817_p5 = scmp.lt.u32.totalorder %s1143_s30, %s813_s16 }
  0x51   :  { %p819_p7 = scmp.lt.u32.totalorder %s813_s16, %s73_s13 }
  0x52   :  { %p818_p6 = por %p817_p5, %p816_p4 }
  0x54   :  { %p820_p8 = por %p819_p7, %p818_p6 }
  0x56   :  { %p821_p9 = pnand %p820_p8, %p814_p3 }
  0x58   :  { %824 = shalt.err (!%p821_p9)  }
  0x59   :  { %s825_s21 = scalar_lea.vmem %s1128_s17, 16  ;;  %p830_p11 = scmp.lt.s32.totalorder %s1128_s17, %s1122_s14 }
  0x5a   :  { %p826_p10 = scmp.ne.s32.totalorder %s1128_s17, %s825_s21  ;;  %p831_p12 = scmp.lt.s32.totalorder %s1152_s2, %s825_s21 }
  0x5c   :  { %p832_p13 = por %p831_p12, %p830_p11 }
  0x5e   :  { %p833_p0 = pnand %p832_p13, %p826_p10 }
  0x60   :  { %836 = shalt.err (!%p833_p0)  }
  0x61   :  { %86 = dma.hbm_to_vmem [thread:$0]  %s73_s13, 16, %s1128_s17, [#allocation3 + $0x1] }
  0x62   :  { %s90_s24 = scalar_lea.hbm %s1289_s1, %s609_s15  ;;  %s611_s25 = sshll.u32 %s1130_s0, 4 }
  0x63   :  { %s837_s26 = scalar_lea.hbm %s90_s24, 16  ;;  %p840_p2 = scmp.lt.u32.totalorder %s90_s24, %s1289_s1 }
  0x64   :  { %p838_p1 = scmp.ne.s32.totalorder %s90_s24, %s837_s26  ;;  %p841_p3 = scmp.lt.u32.totalorder %s1143_s30, %s837_s26 }
  0x65   :  { %p843_p5 = scmp.lt.u32.totalorder %s837_s26, %s90_s24 }
  0x66   :  { %p842_p4 = por %p841_p3, %p840_p2 }
  0x68   :  { %p844_p6 = por %p843_p5, %p842_p4 }
  0x6a   :  { %p845_p7 = pnand %p844_p6, %p838_p1 }
  0x6c   :  { %848 = shalt.err (!%p845_p7)  }
  0x6d   :  { %s849_s17 = scalar_lea.vmem %s1132_s3, 16  ;;  %p854_p9 = scmp.lt.s32.totalorder %s1132_s3, %s1122_s14 }
  0x6e   :  { %p850_p8 = scmp.ne.s32.totalorder %s1132_s3, %s849_s17  ;;  %p855_p10 = scmp.lt.s32.totalorder %s1152_s2, %s849_s17 }
  0x70   :  { %p856_p11 = por %p855_p10, %p854_p9 }
  0x72   :  { %p857_p12 = pnand %p856_p11, %p850_p8 }
  0x74   :  { %860 = shalt.err (!%p857_p12)  }
  0x75   :  { %103 = dma.hbm_to_vmem [thread:$0]  %s90_s24, 16, %s1132_s3, [#allocation3 + $0x2] }
  0x76   :  { %s107_s8 = scalar_lea.hbm %s1289_s1, %s611_s25 }
  0x77   :  { %s861_s9 = scalar_lea.hbm %s107_s8, 16  ;;  %p864_p0 = scmp.lt.u32.totalorder %s107_s8, %s1289_s1 }
  0x78   :  { %p862_p13 = scmp.ne.s32.totalorder %s107_s8, %s861_s9  ;;  %p865_p1 = scmp.lt.u32.totalorder %s1143_s30, %s861_s9 }
  0x79   :  { %p867_p3 = scmp.lt.u32.totalorder %s861_s9, %s107_s8 }
  0x7a   :  { %p866_p2 = por %p865_p1, %p864_p0 }
  0x7c   :  { %p868_p4 = por %p867_p3, %p866_p2 }
  0x7e   :  { %p869_p5 = pnand %p868_p4, %p862_p13 }
  0x80   :  { %872 = shalt.err (!%p869_p5)  }
  0x81   :  { %s873_s12 = scalar_lea.vmem %s118_s22, 16  ;;  %p878_p7 = scmp.lt.s32.totalorder %s118_s22, %s1122_s14 }
  0x82   :  { %p874_p6 = scmp.ne.s32.totalorder %s118_s22, %s873_s12  ;;  %p879_p8 = scmp.lt.s32.totalorder %s1152_s2, %s873_s12 }
  0x84   :  { %p880_p9 = por %p879_p8, %p878_p7 }
  0x86   :  { %p881_p10 = pnand %p880_p9, %p874_p6 }
  0x88   :  { %884 = shalt.err (!%p881_p10)  }
  0x89   :  { %120 = dma.hbm_to_vmem [thread:$0]  %s107_s8, 16, %s118_s22, [#allocation3 + $0x3] }
  0x8a   :  { %s612_s3 = sld [smem:[#allocation5 + $0x4]]  ;;  %s1036_s13 = smov [#allocation2 + $0x4]  }
  0x8b   :  { %s134_s15 = sshll.u32 %s1036_s13, 4  ;;  %s1196_s16 = sld [smem:[#allocation5 + $0x5]]  ;;  %s135_s15 = int_to_ptr.vmem [resolvable:$true] %s134_s15 }
  0x8c   :  { %s1037_s19 = smov [#allocation2 + $0x5]   ;;  %s1198_s21 = sld [smem:[#allocation5 + $0x6]] }
  0x8d   :  { %s151_s20 = sshll.u32 %s1037_s19, 4  ;;  %s1038_s18 = smov [#allocation2 + $0x6]   ;;  %s1200_s20 = int_to_ptr.vmem [resolvable:$true] %s151_s20 }
  0x8e   :  { %s168_s23 = sshll.u32 %s1038_s18, 4  ;;  %s1202_s24 = sld [smem:[#allocation5 + $0x7]]  ;;  %s1204_s23 = int_to_ptr.vmem [resolvable:$true] %s168_s23 }
  0x90   :  { %s613_s25 = sshll.u32 %s612_s3, 4 }
  0x91   :  { %s124_s27 = scalar_lea.hbm %s1289_s1, %s613_s25  ;;  %s615_s28 = sshll.u32 %s1196_s16, 4 }
  0x92   :  { %s885_s17 = scalar_lea.hbm %s124_s27, 16  ;;  %p888_p12 = scmp.lt.u32.totalorder %s124_s27, %s1289_s1 }
  0x93   :  { %p886_p11 = scmp.ne.s32.totalorder %s124_s27, %s885_s17  ;;  %p889_p13 = scmp.lt.u32.totalorder %s1143_s30, %s885_s17 }
  0x94   :  { %p891_p1 = scmp.lt.u32.totalorder %s885_s17, %s124_s27 }
  0x95   :  { %p890_p0 = por %p889_p13, %p888_p12 }
  0x97   :  { %p892_p2 = por %p891_p1, %p890_p0 }
  0x99   :  { %p893_p3 = pnand %p892_p2, %p886_p11 }
  0x9b   :  { %896 = shalt.err (!%p893_p3)  }
  0x9c   :  { %s897_s8 = scalar_lea.vmem %s135_s15, 16  ;;  %p902_p5 = scmp.lt.s32.totalorder %s135_s15, %s1122_s14 }
  0x9d   :  { %p898_p4 = scmp.ne.s32.totalorder %s135_s15, %s897_s8  ;;  %p903_p6 = scmp.lt.s32.totalorder %s1152_s2, %s897_s8 }
  0x9f   :  { %p904_p7 = por %p903_p6, %p902_p5 }
  0xa1   :  { %p905_p8 = pnand %p904_p7, %p898_p4 }
  0xa3   :  { %908 = shalt.err (!%p905_p8)  }
  0xa4   :  { %137 = dma.hbm_to_vmem [thread:$0]  %s124_s27, 16, %s135_s15, [#allocation3 + $0x4] }
  0xa5   :  { %s141_s11 = scalar_lea.hbm %s1289_s1, %s615_s28  ;;  %s617_s12 = sshll.u32 %s1198_s21, 4 }
  0xa6   :  { %s909_s3 = scalar_lea.hbm %s141_s11, 16  ;;  %p912_p10 = scmp.lt.u32.totalorder %s141_s11, %s1289_s1 }
  0xa7   :  { %p910_p9 = scmp.ne.s32.totalorder %s141_s11, %s909_s3  ;;  %p913_p11 = scmp.lt.u32.totalorder %s1143_s30, %s909_s3 }
  0xa8   :  { %p915_p13 = scmp.lt.u32.totalorder %s909_s3, %s141_s11 }
  0xa9   :  { %p914_p12 = por %p913_p11, %p912_p10 }
  0xab   :  { %p916_p0 = por %p915_p13, %p914_p12 }
  0xad   :  { %p917_p1 = pnand %p916_p0, %p910_p9 }
  0xaf   :  { %920 = shalt.err (!%p917_p1)  }
  0xb0   :  { %s921_s15 = scalar_lea.vmem %s1200_s20, 16  ;;  %p926_p3 = scmp.lt.s32.totalorder %s1200_s20, %s1122_s14 }
  0xb1   :  { %p922_p2 = scmp.ne.s32.totalorder %s1200_s20, %s921_s15  ;;  %p927_p4 = scmp.lt.s32.totalorder %s1152_s2, %s921_s15 }
  0xb3   :  { %p928_p5 = por %p927_p4, %p926_p3 }
  0xb5   :  { %p929_p6 = pnand %p928_p5, %p922_p2 }
  0xb7   :  { %932 = shalt.err (!%p929_p6)  }
  0xb8   :  { %154 = dma.hbm_to_vmem [thread:$0]  %s141_s11, 16, %s1200_s20, [#allocation3 + $0x5] }
  0xb9   :  { %s158_s18 = scalar_lea.hbm %s1289_s1, %s617_s12  ;;  %s619_s25 = sshll.u32 %s1202_s24, 4 }
  0xba   :  { %s933_s22 = scalar_lea.hbm %s158_s18, 16  ;;  %p936_p8 = scmp.lt.u32.totalorder %s158_s18, %s1289_s1 }
  0xbb   :  { %p934_p7 = scmp.ne.s32.totalorder %s158_s18, %s933_s22  ;;  %p937_p9 = scmp.lt.u32.totalorder %s1143_s30, %s933_s22 }
  0xbc   :  { %p939_p11 = scmp.lt.u32.totalorder %s933_s22, %s158_s18 }
  0xbd   :  { %p938_p10 = por %p937_p9, %p936_p8 }
  0xbf   :  { %p940_p12 = por %p939_p11, %p938_p10 }
  0xc1   :  { %p941_p13 = pnand %p940_p12, %p934_p7 }
  0xc3   :  { %944 = shalt.err (!%p941_p13)  }
  0xc4   :  { %s945_s20 = scalar_lea.vmem %s1204_s23, 16  ;;  %p950_p1 = scmp.lt.s32.totalorder %s1204_s23, %s1122_s14 }
  0xc5   :  { %p946_p0 = scmp.ne.s32.totalorder %s1204_s23, %s945_s20  ;;  %p951_p2 = scmp.lt.s32.totalorder %s1152_s2, %s945_s20 }
  0xc7   :  { %p952_p3 = por %p951_p2, %p950_p1 }
  0xc9   :  { %p953_p4 = pnand %p952_p3, %p946_p0 }
  0xcb   :  { %956 = shalt.err (!%p953_p4)  }
  0xcc   :  { %171 = dma.hbm_to_vmem [thread:$0]  %s158_s18, 16, %s1204_s23, [#allocation3 + $0x6] }
  0xcd   :  { %s175_s17 = scalar_lea.hbm %s1289_s1, %s619_s25  ;;  %s1039_s0 = smov [#allocation2 + $0x7]  }
  0xce   :  { %s185_s29 = sshll.u32 %s1039_s0, 4  ;;  %s957_s8 = scalar_lea.hbm %s175_s17, 16  ;;  %s186_s29 = int_to_ptr.vmem [resolvable:$true] %s185_s29 }
  0xcf   :  { %p958_p5 = scmp.ne.s32.totalorder %s175_s17, %s957_s8  ;;  %p960_p6 = scmp.lt.u32.totalorder %s175_s17, %s1289_s1 }
  0xd0   :  { %p961_p7 = scmp.lt.u32.totalorder %s1143_s30, %s957_s8  ;;  %p963_p9 = scmp.lt.u32.totalorder %s957_s8, %s175_s17 }
  0xd2   :  { %p962_p8 = por %p961_p7, %p960_p6 }
  0xd4   :  { %p964_p10 = por %p963_p9, %p962_p8 }
  0xd6   :  { %p965_p11 = pnand %p964_p10, %p958_p5 }
  0xd8   :  { %968 = shalt.err (!%p965_p11)  }
  0xd9   :  { %s969_s23 = scalar_lea.vmem %s186_s29, 16  ;;  %p974_p13 = scmp.lt.s32.totalorder %s186_s29, %s1122_s14 }
  0xda   :  { %p970_p12 = scmp.ne.s32.totalorder %s186_s29, %s969_s23  ;;  %p975_p0 = scmp.lt.s32.totalorder %s1152_s2, %s969_s23 }
  0xdc   :  { %p976_p1 = por %p975_p0, %p974_p13 }
  0xde   :  { %p977_p2 = pnand %p976_p1, %p970_p12 }
  0xe0   :  { %980 = shalt.err (!%p977_p2)  }
  0xe1   :  { %188 = dma.hbm_to_vmem [thread:$0]  %s175_s17, 16, %s186_s29, [#allocation3 + $0x7] }
  0xe2   :  { %1009 = dma.done.wait [#allocation3], 16 }
  0xe3   :  { %1010 = vsyncadd [#allocation3], 4294967280 }
  0xe4   :  { %1011 = dma.done.wait [#allocation3 + $0x1], 16 }
  0xe5   :  { %1012 = vsyncadd [#allocation3 + $0x1], 4294967280 }
  0xe6   :  { %1013 = dma.done.wait [#allocation3 + $0x2], 16 }
  0xe7   :  { %1014 = vsyncadd [#allocation3 + $0x2], 4294967280 }
  0xe8   :  { %1015 = dma.done.wait [#allocation3 + $0x3], 16 }
  0xe9   :  { %1016 = vsyncadd [#allocation3 + $0x3], 4294967280 }
  0xea   :  { %1017 = dma.done.wait [#allocation3 + $0x4], 16 }
  0xeb   :  { %1018 = vsyncadd [#allocation3 + $0x4], 4294967280 }
  0xec   :  { %1019 = dma.done.wait [#allocation3 + $0x5], 16 }
  0xed   :  { %1020 = vsyncadd [#allocation3 + $0x5], 4294967280 }
  0xee   :  { %1021 = dma.done.wait [#allocation3 + $0x6], 16 }
  0xef   :  { %1022 = vsyncadd [#allocation3 + $0x6], 4294967280 }
  0xf0   :  { %1023 = dma.done.wait [#allocation3 + $0x7], 16 }
  0xf1   :  { %1024 = vsyncadd [#allocation3 + $0x7], 4294967280  ;;  %v1040_v0 = vmov 0.0|0.0   ;;  %vm1041_vm0 = vmmov 0   ;;  %v1042_v1 = vmov 0.0   ;;  %v218_v2 = vld [vmem:[#allocation9] sm:$0xff] }
  0xf2   :  { %682 = vmatprep.subr.bf16.mxu0 %v1040_v0  ;;  %688 = vmatprep.subr.bf16.mxu1 %v1040_v0  ;;  %v219_v3 = vld [vmem:[#allocation9 + $0x8] sm:$0xff]  ;;  %v214_v4 = vld [vmem:[#allocation6] sm:$0xff]  ;;  %v220_v7 = vld [vmem:[#allocation9 + $0x10] sm:$0xff]  ;;  %vm236_vm1 = vcmask 261120   ;;  %vm516_vm2 = vcmask 523520  }
  0xf3   :  { %657 = vmatprep.mubr.msk.f32.mxu0 %vm1041_vm0, %v1042_v1  ;;  %668 = vmatprep.mubr.msk.f32.mxu1 %vm1041_vm0, %v1042_v1  ;;  %v683_v5 = vpack.c.bf16 %v219_v3, %v218_v2  ;;  %v215_v6 = vld [vmem:[#allocation6 + $0x8] sm:$0xff]  ;;  %v221_v8 = vld [vmem:[#allocation9 + $0x18] sm:$0xff]  ;;  %v222_v9 = vadd.f32 %v218_v2, %v214_v4  ;;  %v216_v11 = vld [vmem:[#allocation6 + $0x10] sm:$0xff] }
  0xf4   :  { %v689_v10 = vpack.c.bf16 %v215_v6, %v214_v4  ;;  %v217_v12 = vld [vmem:[#allocation6 + $0x18] sm:$0xff]  ;;  %v223_v13 = vadd.f32 %v219_v3, %v215_v6  ;;  %v686_v14 = vpack.c.bf16 %v221_v8, %v220_v7  ;;  %v224_v15 = vadd.f32 %v220_v7, %v216_v11  ;;  %v234_v19 = vld [vmem:[%s1293_s5] sm:$0xff]  ;;  %s1043_s5 = smov 32  }
  0xf5   :  { %684 = vmatpush3.bf16.msra.mxu0 %v683_v5  ;;  %v225_v16 = vadd.f32 %v221_v8, %v217_v12  ;;  %v692_v17 = vpack.c.bf16 %v217_v12, %v216_v11  ;;  %v233_v20 = vld [vmem:[#allocation2] sm:$0xff]  ;;  %v620_v22 = vld [vmem:[%s1292_s4] ss:$0 sm:$0xff]  ;;  %s1044_s4 = smov 64  }
  0xf6   :  { %690 = vmatpush3.bf16.msra.mxu1 %v689_v10  ;;  %685 = vmatprep.subr.bf16.mxu0 %v1040_v0  ;;  %v695_v18 = vpack.c.bf16 %v223_v13, %v222_v9  ;;  %v235_v29 = vld [vmem:[%s1294_s6] sm:$0xff]  ;;  %s1045_s6 = smov [#allocation11]  }
  0xf7   :  { %691 = vmatprep.subr.bf16.mxu1 %v1040_v0  ;;  %v698_v40 = vpack.c.bf16 %v225_v16, %v224_v15  ;;  %s524_s3 = sshll.u32 %s1045_s6, 4  ;;  %s525_s3 = int_to_ptr.vmem [resolvable:$true] %s524_s3 }
  0xf8   :  { %s981_s13 = scalar_lea.vmem %s525_s3, 128  ;;  %p986_p4 = scmp.lt.s32.totalorder %s525_s3, %s525_s3 }
  0xf9   :  { %687 = vmatpush3.bf16.msra.mxu0 %v686_v14  ;;  %p982_p3 = scmp.ne.s32.totalorder %s525_s3, %s981_s13  ;;  %p987_p5 = scmp.lt.s32.totalorder %s981_s13, %s981_s13 }
  0xfa   :  { %693 = vmatpush3.bf16.msra.mxu1 %v692_v17  ;;  %694 = vmatprep.subr.bf16.mxu0 %v1040_v0 }
  0xfb   :  { %p988_p6 = por %p987_p5, %p986_p4 }
  0xfc   :  { %658 = vmatmul.mubr.msk.f32.vlgmr.msra.gmra.mrb[0].mxu0 %vm236_vm1, %v234_v19 }
  0xfd   :  { %669 = vmatmul.mubr.msk.f32.vlgmr.msra.gmra.mrb[0].mxu1 %vm236_vm1, %v233_v20  ;;  %696 = vmatpush3.bf16.msra.mxu0 %v695_v18  ;;  %p989_p7 = pnand %p988_p6, %p982_p3 }
  0xfe   :  { %697 = vmatprep.subr.bf16.mxu0 %v1040_v0  ;;  %679 = vmatprep.mubr.msk.f32.mxu0 %vm1041_vm0, %v1042_v1 }
 0x101   :  { %699 = vmatpush3.bf16.msra.mxu0 %v698_v40 }
 0x1cf   :  { %v306_v21 = vpop.f32.mrb[0].mxu0 }
 0x1d0   :  { %v379_v23 = vpop.f32.mrb[0].mxu1  ;;  %v659_v24 = vpop.f32.mrb[1].mxu0 }
 0x1d1   :  { %v380_v25 = vadd.f32 %v379_v23, %v306_v21  ;;  %v670_v26 = vpop.f32.mrb[1].mxu1 }
 0x1d3   :  { %v383_v27 = vadd.f32 %v620_v22, %v380_v25 }
 0x1d5   :  { %719 = vtanh.f32 %v383_v27  ;;  %v623_v30 = vmul.f32 -1.442695, %v383_v27 }
 0x1d7   :  { %721 = vpow2.f32 %v623_v30 }
 0x1df   :  { %v720_v28 = vpop.eup %719 }
 0x1e0   :  { %397 = vrot.lane.b32.xlu0 %v720_v28, %s1043_s5 }
 0x1e1   :  { %v722_v31 = vpop.eup %721 }
 0x1e2   :  { %v387_v32 = vadd.f32 1.0, %v722_v31 }
 0x1e4   :  { %392 = vrot.lane.b32.xlu0 %v235_v29, %s1043_s5  ;;  %723 = vrcp.f32 %v387_v32 }
 0x1ee   :  { %v724_v33 = vpop.eup %723 }
 0x252   :  { %v398_v34 = vpop.permute.xlu0 %397 }
 0x253   :  { %v400_v35 = vmul.f32 %v724_v33, %v398_v34 }
 0x255   :  { %402 = vrot.lane.b32.xlu1 %v400_v35, %s1043_s5 }
 0x256   :  { %v393_v36 = vpop.permute.xlu0 %392 }
 0x257   :  { %v395_v37 = vmul.f32 %v724_v33, %v393_v36 }
 0x2c7   :  { %v403_v38 = vpop.permute.xlu1 %402 }
 0x2c8   :  { %v405_v39 = vadd.f32 %v403_v38, %v395_v37 }
 0x2ca   :  { %725 = vtanh.f32 %v405_v39 }
 0x2d4   :  { %v726_v41 = vpop.eup %725 }
 0x2d5   :  { %408 = vrot.lane.b32.xlu1 %v726_v41, %s1043_s5 }
 0x347   :  { %v409_v42 = vpop.permute.xlu1 %408 }
 0x348   :  { %v411_v43 = vmul.f32 %v724_v33, %v409_v42 }
 0x34a   :  { %413 = vrot.lane.b32.xlu0 %v411_v43, %s1044_s4 }
 0x3bc   :  { %v414_v44 = vpop.permute.xlu0 %413 }
 0x3bd   :  { %680 = vmatmul.mubr.msk.f32.vlgmr.msra.gmra.mrb[2].mxu0 %vm236_vm1, %v414_v44 }
 0x490   :  { %v483_v45 = vpop.f32.mrb[2].mxu0 }
 0x491   :  { %v484_v46 = vadd.f32 %v620_v22, %v483_v45  ;;  %v681_v47 = vpop.f32.mrb[3].mxu0 }
 0x493   :  { %727 = vtanh.f32 %v484_v46  ;;  %v625_v49 = vmul.f32 -1.442695, %v484_v46 }
 0x495   :  { %729 = vpow2.f32 %v625_v49 }
 0x49d   :  { %v728_v48 = vpop.eup %727 }
 0x49e   :  { %496 = vrot.lane.b32.xlu1 %v728_v48, %s1043_s5 }
 0x49f   :  { %v730_v50 = vpop.eup %729 }
 0x4a0   :  { %v490_v51 = vadd.f32 1.0, %v730_v50 }
 0x4a2   :  { %731 = vrcp.f32 %v490_v51 }
 0x4ac   :  { %v732_v52 = vpop.eup %731 }
 0x4ad   :  { %v494_v55 = vmul.f32 %v732_v52, %v405_v39 }
 0x510   :  { %v497_v53 = vpop.permute.xlu1 %496 }
 0x511   :  { %v499_v54 = vmul.f32 %v732_v52, %v497_v53 }
 0x513   :  { %501 = vrot.lane.b32.xlu0 %v499_v54, %s1043_s5 }
 0x585   :  { %v502_v56 = vpop.permute.xlu0 %501 }
 0x586   :  { %v504_v57 = vadd.f32 %v502_v56, %v494_v55 }
 0x588   :  { %733 = vtanh.f32 %v504_v57 }
 0x592   :  { %v734_v58 = vpop.eup %733 }
 0x593   :  { %507 = vrot.lane.b32.xlu1 %v734_v58, %s1043_s5 }
 0x605   :  { %v508_v59 = vpop.permute.xlu1 %507 }
 0x606   :  { %v510_v60 = vmul.f32 %v732_v52, %v508_v59 }
 0x608   :  { %512 = vrot.lane.b32.xlu0 %v510_v60, %s1044_s4 }
 0x67a   :  { %v513_v61 = vpop.permute.xlu0 %512 }
 0x67b   :  { %515 = vst.msk [vmem:[#allocation11] sm:$0xff] %vm236_vm1, %v513_v61 }
 0x67c   :  { %517 = vst.msk [vmem:[#allocation11] sm:$0xff] %vm516_vm2, %v504_v57 }
 0x67d   :  { %992 = shalt.err (!%p989_p7)
}
 0x67e   :  { %s993_s19 = scalar_lea.hbm %s1295_s7, 128 }
 0x67f   :  { %p994_p8 = scmp.ne.s32.totalorder %s1295_s7, %s993_s19  ;;  %p997_p9 = scmp.lt.u32.totalorder %s993_s19, %s1295_s7 }
 0x681   :  { %p999_p10 = pnand %p997_p9, %p994_p8 }
 0x683   :  { %1002 = shalt.err (!%p999_p10)
}
 0x684   :  { %527 = dma.vmem_to_hbm [thread:$0]  %s525_s3, 128, %s1295_s7, [#allocation8]  }
 0x685   :  { %1025 = dma.done.wait [#allocation8], 128  }
 0x686   :  { %1026 = vsyncadd [#allocation8], 4294967168 }
 0x687   :  { %531 = vsyncpa [#allocation7], 1 }
 0x688   :  { %532 = vsyncpa [#allocation10], 1 }
 0x689   :  { %533 = vsyncpa [#allocation8], 1 }
 0x68a   :  { %534 = vsyncmov [#allocation3] }
 0x68d   :  { %s535_s20 = vpop.sfrf %534 }
 0x68e   :  { %p626_p11 = scmp.ne.s32.totalorder %s535_s20, 0 }
 0x690   :  { %539 = shalt.err (%p626_p11)  }
 0x691   :  { %541 = vsyncmov [#allocation3 + $0x1] }
 0x694   :  { %s542_s24 = vpop.sfrf %541 }
 0x695   :  { %p627_p12 = scmp.ne.s32.totalorder %s542_s24, 0 }
 0x697   :  { %546 = shalt.err (%p627_p12)  }
 0x698   :  { %548 = vsyncmov [#allocation3 + $0x2] }
 0x69b   :  { %s549_s28 = vpop.sfrf %548 }
 0x69c   :  { %p628_p13 = scmp.ne.s32.totalorder %s549_s28, 0 }
 0x69e   :  { %553 = shalt.err (%p628_p13)  }
 0x69f   :  { %555 = vsyncmov [#allocation3 + $0x3] }
 0x6a2   :  { %s556_s17 = vpop.sfrf %555 }
 0x6a3   :  { %p629_p0 = scmp.ne.s32.totalorder %s556_s17, 0 }
 0x6a5   :  { %560 = shalt.err (%p629_p0)  }
 0x6a6   :  { %562 = vsyncmov [#allocation3 + $0x4] }
 0x6a9   :  { %s563_s7 = vpop.sfrf %562 }
 0x6aa   :  { %p630_p1 = scmp.ne.s32.totalorder %s563_s7, 0 }
 0x6ac   :  { %567 = shalt.err (%p630_p1)  }
 0x6ad   :  { %569 = vsyncmov [#allocation3 + $0x5] }
 0x6b0   :  { %s570_s0 = vpop.sfrf %569 }
 0x6b1   :  { %p631_p2 = scmp.ne.s32.totalorder %s570_s0, 0 }
 0x6b3   :  { %574 = shalt.err (%p631_p2)  }
 0x6b4   :  { %576 = vsyncmov [#allocation3 + $0x6] }
 0x6b7   :  { %s577_s29 = vpop.sfrf %576 }
 0x6b8   :  { %p632_p3 = scmp.ne.s32.totalorder %s577_s29, 0 }
 0x6ba   :  { %581 = shalt.err (%p632_p3)  }
 0x6bb   :  { %583 = vsyncmov [#allocation3 + $0x7] }
 0x6be   :  { %s584_s8 = vpop.sfrf %583 }
 0x6bf   :  { %p633_p4 = scmp.ne.s32.totalorder %s584_s8, 0 }
 0x6c1   :  { %588 = shalt.err (%p633_p4)  }

</bundles_post_ra>
